<compile_context>
chip_gen: v5e
topology: v5e:2x2
jax: 0.10.0
libtpu: 0.0.40
codegen_flags: <defaults>
</compile_context>

<pallas_src>
import functools

import jax
import jax.numpy as jnp
from jax.experimental import pallas as pl
from jax.experimental.pallas import tpu as pltpu


def _round_up(x, m):
    return ((x + m - 1) // m) * m


def _triplet_l2_kernel(anchor_ref, pos_ref, neg_ref, out_ref,
                       pos_acc, neg_acc, *, margin, n_actual, mask_n, use_mxu):
    n_idx = pl.program_id(1)

    @pl.when(n_idx == 0)
    def _init():
        pos_acc[...] = jnp.zeros_like(pos_acc)
        neg_acc[...] = jnp.zeros_like(neg_acc)

    anchor = anchor_ref[...]                     # (Bt, D)
    pos = pos_ref[...]                           # (Bt, Nt, D)
    neg = neg_ref[...]                           # (Bt, Nt, D)
    bt, nt, _ = pos.shape

    if use_mxu:
        # ||a - x||^2 = ||a||^2 + ||x||^2 - 2 a.x ; cross term runs on the MXU.
        a_col = anchor[:, :, None]                                      # (Bt, D, 1)
        a_sq = jnp.sum(anchor * anchor, axis=1, keepdims=True)          # (Bt, 1)
        pos_sq = jnp.sum(pos * pos, axis=2)                             # (Bt, Nt)
        neg_sq = jnp.sum(neg * neg, axis=2)                             # (Bt, Nt)
        pos_cross = jnp.einsum(
            "bnd,bdk->bnk", pos, a_col,
            preferred_element_type=jnp.float32,
            precision=jax.lax.Precision.HIGHEST)[..., 0]                # (Bt, Nt)
        neg_cross = jnp.einsum(
            "bnd,bdk->bnk", neg, a_col,
            preferred_element_type=jnp.float32,
            precision=jax.lax.Precision.HIGHEST)[..., 0]                # (Bt, Nt)
        # Clamp: catastrophic cancellation can yield tiny negatives.
        pos_d2 = jnp.maximum(a_sq + pos_sq - 2.0 * pos_cross, 0.0)
        neg_d2 = jnp.maximum(a_sq + neg_sq - 2.0 * neg_cross, 0.0)
    else:
        a = anchor[:, None, :]                                          # (Bt, 1, D)
        pos_d2 = jnp.sum((a - pos) ** 2, axis=2)                        # (Bt, Nt)
        neg_d2 = jnp.sum((a - neg) ** 2, axis=2)                        # (Bt, Nt)

    pos_dist = jnp.sqrt(pos_d2)
    neg_dist = jnp.sqrt(neg_d2)
    # TODO(synk): if a backward pass is ever added, guard sqrt at exactly zero
    # distance (anchor == candidate) to avoid inf/NaN gradients.

    if mask_n:
        # Mask the zero-padded tail of the candidate (N) dimension.
        col = jax.lax.broadcasted_iota(jnp.int32, (bt, nt), 1) + n_idx * nt
        valid = (col < n_actual).astype(pos_dist.dtype)
        pos_dist = pos_dist * valid
        neg_dist = neg_dist * valid

    pos_acc[...] += jnp.sum(pos_dist, axis=1, keepdims=True)            # (Bt, 1)
    neg_acc[...] += jnp.sum(neg_dist, axis=1, keepdims=True)            # (Bt, 1)

    @pl.when(n_idx == pl.num_programs(1) - 1)
    def _finalize():
        inv_n = jnp.float32(1.0 / n_actual)      # fold 1/N once, not per step
        per_b = jnp.maximum(
            (pos_acc[...] - neg_acc[...]) * inv_n + jnp.float32(margin), 0.0)
        # Lane-dense store of per-batch losses (broadcast across 128 lanes).
        out_ref[...] = jnp.broadcast_to(per_b, out_ref.shape)


def triplet_mean_loss_l2_distance(anchor, pos_encs, neg_encs, margin=1.0,
                                  block_n=128, mxu_min_d=256):
    anchor = jnp.asarray(anchor, jnp.float32)
    pos_encs = jnp.asarray(pos_encs, jnp.float32)
    neg_encs = jnp.asarray(neg_encs, jnp.float32)

    B, D = anchor.shape
    _, N, _ = pos_encs.shape

    # --- tile sizes -----------------------------------------------------------
    Bt = 8                                           # sublane-aligned batch tile
    B_pad = _round_up(B, Bt)

    # Keep each (Bt, Nt, D) f32 tile around <= ~2 MiB so that
    # 2 inputs x 2 pipeline buffers stays far below v7x's 32 MiB scoped VMEM.
    bytes_per_n_row = Bt * D * 4
    max_nt = max(8, ((2 * 1024 * 1024) // bytes_per_n_row) // 8 * 8)
    Nt = min(block_n, max_nt, _round_up(N, 8))
    N_pad = _round_up(N, Nt)

    # --- padding (masked / dropped inside kernel & wrapper) -------------------
    if B_pad != B:
        anchor = jnp.pad(anchor, ((0, B_pad - B), (0, 0)))
    if B_pad != B or N_pad != N:
        pad3 = ((0, B_pad - B), (0, N_pad - N), (0, 0))
        pos_encs = jnp.pad(pos_encs, pad3)
        neg_encs = jnp.pad(neg_encs, pad3)

    grid = (B_pad // Bt, N_pad // Nt)
    use_mxu = D >= mxu_min_d
    # TODO(synk): for very small D (<128) lane utilization of the subtract-
    # square-reduce is ~D/128; a (B*N, D)-packed layout could improve it but is
    # not worth it at the overhead-bound shapes exercised here.

    kernel = functools.partial(
        _triplet_l2_kernel,
        margin=float(margin),
        n_actual=N,
        mask_n=(N_pad != N),
        use_mxu=use_mxu,
    )

    out = pl.pallas_call(
        kernel,
        out_shape=jax.ShapeDtypeStruct((B_pad, 128), jnp.float32),
        grid_spec=pltpu.PrefetchScalarGridSpec(
            num_scalar_prefetch=0,
            grid=grid,
            in_specs=[
                # anchor: constant block index along the N axis -> fetched once
                # per B tile (Pallas skips the DMA when the index is unchanged).
                pl.BlockSpec((Bt, D), lambda b, n: (b, 0)),
                pl.BlockSpec((Bt, Nt, D), lambda b, n: (b, n, 0)),
                pl.BlockSpec((Bt, Nt, D), lambda b, n: (b, n, 0)),
            ],
            out_specs=pl.BlockSpec((Bt, 128), lambda b, n: (b, 0)),
            scratch_shapes=[
                pltpu.VMEM((Bt, 1), jnp.float32),   # running sum of pos dist
                pltpu.VMEM((Bt, 1), jnp.float32),   # running sum of neg dist
            ],
        ),
        compiler_params=pltpu.CompilerParams(
            dimension_semantics=("parallel", "arbitrary")),
    )(anchor, pos_encs, neg_encs)

    # Final tiny reduction over the real batch rows (padded rows discarded).
    return jnp.mean(out[:B, 0])


def _reference(anchor, pos_encs, neg_encs, margin=1.0):
    a = anchor[:, None, :]
    pd = jnp.linalg.norm(a - pos_encs, axis=2)
    nd = jnp.linalg.norm(a - neg_encs, axis=2)
    loss = jax.nn.relu(jnp.mean(pd, axis=1) - jnp.mean(nd, axis=1) + margin)
    return jnp.mean(loss)


if __name__ == "__main__":
    key = jax.random.PRNGKey(0)

    def run_case(B, N, D, margin=1.0, rtol=1e-5, atol=1e-5):
        case_key = jax.random.fold_in(key, B * 100003 + N * 131 + D)
        k1, k2, k3 = jax.random.split(case_key, 3)
        anchor = jax.random.normal(k1, (B, D), dtype=jnp.float32)
        pos = jax.random.normal(k2, (B, N, D), dtype=jnp.float32)
        neg = jax.random.normal(k3, (B, N, D), dtype=jnp.float32)

        out = jax.block_until_ready(
            triplet_mean_loss_l2_distance(anchor, pos, neg, margin=margin))
        ref = _reference(anchor, pos, neg, margin=margin)
        assert jnp.allclose(out, ref, rtol=rtol, atol=atol), (B, N, D, out, ref)

    # 1) original toy shape (direct VPU path, single tile).
    run_case(4, 8, 32)
    # 2) non-divisible B and N: exercises padding + in-kernel N masking.
    run_case(5, 13, 32)
    # 3) multiple B tiles (parallel axis) and multiple N steps (arbitrary axis,
    #    scratch accumulator + pl.when init/finalize) with a ragged last N tile.
    run_case(20, 300, 64)
    # 4) large-D path: MXU distance decomposition.
    run_case(4, 8, 256, rtol=1e-4, atol=1e-4)

    print("KERNEL_OK")
</pallas_src>

<mosaic_0001>
module attributes {stable_mosaic.version = 11 : i64} {
  func.func @_triplet_l2_kernel(%arg0: i32, %arg1: i32, %arg2: memref<8x32xf32, #tpu.memory_space<vmem>>, %arg3: memref<8x8x32xf32, #tpu.memory_space<vmem>>, %arg4: memref<8x8x32xf32, #tpu.memory_space<vmem>>, %arg5: memref<8x128xf32, #tpu.memory_space<vmem>>, %arg6: memref<8x1xf32, #tpu.memory_space<vmem>>, %arg7: memref<8x1xf32, #tpu.memory_space<vmem>>) attributes {dimension_semantics = [#tpu.dimension_semantics<parallel>, #tpu.dimension_semantics<arbitrary>], iteration_bounds = array<i64: 1, 1>, scalar_prefetch = 0 : i64, scratch_operands = 2 : i64, tpu.core_type = #tpu.core_type<tc>, window_params = [{transform_indices = @transform_0, window_bounds = array<i64: 8, 32>}, {transform_indices = @transform_1, window_bounds = array<i64: 8, 8, 32>}, {transform_indices = @transform_2, window_bounds = array<i64: 8, 8, 32>}, {transform_indices = @transform_3, window_bounds = array<i64: 8, 128>}]} {
    %c0_i32 = arith.constant 0 : i32
    %0 = arith.cmpi eq, %arg1, %c0_i32 : i32
    %1 = arith.extui %0 : i1 to i32
    %c0_i32_0 = arith.constant 0 : i32
    %2 = arith.cmpi ne, %1, %c0_i32_0 : i32
    scf.if %2 {
      %cst_21 = arith.constant 0.000000e+00 : f32
      %30 = vector.broadcast %cst_21 : f32 to vector<8x1xf32>
      %c0_22 = arith.constant 0 : index
      %c0_23 = arith.constant 0 : index
      %31 = vector.load %arg6[%c0_22, %c0_23] : memref<8x1xf32, #tpu.memory_space<vmem>>, vector<8x1xf32>
      tpu.vector_store %arg6[%c0_22, %c0_23], %30 {strides = array<i32>} : memref<8x1xf32, #tpu.memory_space<vmem>>, vector<8x1xf32>,
      %cst_24 = arith.constant 0.000000e+00 : f32
      %32 = vector.broadcast %cst_24 : f32 to vector<8x1xf32>
      %c0_25 = arith.constant 0 : index
      %c0_26 = arith.constant 0 : index
      %33 = vector.load %arg7[%c0_25, %c0_26] : memref<8x1xf32, #tpu.memory_space<vmem>>, vector<8x1xf32>
      tpu.vector_store %arg7[%c0_25, %c0_26], %32 {strides = array<i32>} : memref<8x1xf32, #tpu.memory_space<vmem>>, vector<8x1xf32>,
    } else {
    }
    %c0 = arith.constant 0 : index
    %c0_1 = arith.constant 0 : index
    %3 = vector.load %arg2[%c0, %c0_1] : memref<8x32xf32, #tpu.memory_space<vmem>>, vector<8x32xf32>
    %c0_2 = arith.constant 0 : index
    %c0_3 = arith.constant 0 : index
    %c0_4 = arith.constant 0 : index
    %4 = vector.load %arg3[%c0_2, %c0_3, %c0_4] : memref<8x8x32xf32, #tpu.memory_space<vmem>>, vector<8x8x32xf32>
    %c0_5 = arith.constant 0 : index
    %c0_6 = arith.constant 0 : index
    %c0_7 = arith.constant 0 : index
    %5 = vector.load %arg4[%c0_5, %c0_6, %c0_7] : memref<8x8x32xf32, #tpu.memory_space<vmem>>, vector<8x8x32xf32>
    %6 = vector.shape_cast %3 : vector<8x32xf32> to vector<8x1x32xf32>
    %7 = vector.broadcast %6 : vector<8x1x32xf32> to vector<8x8x32xf32>
    %8 = arith.subf %7, %4 : vector<8x8x32xf32>
    %9 = arith.mulf %8, %8 : vector<8x8x32xf32>
    %cst = arith.constant dense<0.000000e+00> : vector<8x8xf32>
    %10 = vector.multi_reduction <add>, %9, %cst [2] : vector<8x8x32xf32> to vector<8x8xf32>
    %11 = vector.broadcast %6 : vector<8x1x32xf32> to vector<8x8x32xf32>
    %12 = arith.subf %11, %5 : vector<8x8x32xf32>
    %13 = arith.mulf %12, %12 : vector<8x8x32xf32>
    %cst_8 = arith.constant dense<0.000000e+00> : vector<8x8xf32>
    %14 = vector.multi_reduction <add>, %13, %cst_8 [2] : vector<8x8x32xf32> to vector<8x8xf32>
    %15 = math.sqrt %10 : vector<8x8xf32>
    %16 = math.sqrt %14 : vector<8x8xf32>
    %c0_9 = arith.constant 0 : index
    %c0_10 = arith.constant 0 : index
    %17 = vector.load %arg6[%c0_9, %c0_10] : memref<8x1xf32, #tpu.memory_space<vmem>>, vector<8x1xf32>
    %cst_11 = arith.constant dense<0.000000e+00> : vector<8xf32>
    %18 = vector.multi_reduction <add>, %15, %cst_11 [1] : vector<8x8xf32> to vector<8xf32>
    %19 = vector.shape_cast %18 : vector<8xf32> to vector<8x1xf32>
    %20 = arith.addf %17, %19 : vector<8x1xf32>
    %c0_12 = arith.constant 0 : index
    %c0_13 = arith.constant 0 : index
    %21 = vector.load %arg6[%c0_12, %c0_13] : memref<8x1xf32, #tpu.memory_space<vmem>>, vector<8x1xf32>
    tpu.vector_store %arg6[%c0_12, %c0_13], %20 {strides = array<i32>} : memref<8x1xf32, #tpu.memory_space<vmem>>, vector<8x1xf32>,
    %c0_14 = arith.constant 0 : index
    %c0_15 = arith.constant 0 : index
    %22 = vector.load %arg7[%c0_14, %c0_15] : memref<8x1xf32, #tpu.memory_space<vmem>>, vector<8x1xf32>
    %cst_16 = arith.constant dense<0.000000e+00> : vector<8xf32>
    %23 = vector.multi_reduction <add>, %16, %cst_16 [1] : vector<8x8xf32> to vector<8xf32>
    %24 = vector.shape_cast %23 : vector<8xf32> to vector<8x1xf32>
    %25 = arith.addf %22, %24 : vector<8x1xf32>
    %c0_17 = arith.constant 0 : index
    %c0_18 = arith.constant 0 : index
    %26 = vector.load %arg7[%c0_17, %c0_18] : memref<8x1xf32, #tpu.memory_space<vmem>>, vector<8x1xf32>
    tpu.vector_store %arg7[%c0_17, %c0_18], %25 {strides = array<i32>} : memref<8x1xf32, #tpu.memory_space<vmem>>, vector<8x1xf32>,
    %c0_i32_19 = arith.constant 0 : i32
    %27 = arith.cmpi eq, %arg1, %c0_i32_19 : i32
    %28 = arith.extui %27 : i1 to i32
    %c0_i32_20 = arith.constant 0 : i32
    %29 = arith.cmpi ne, %28, %c0_i32_20 : i32
    scf.if %29 {
      %c0_21 = arith.constant 0 : index
      %c0_22 = arith.constant 0 : index
      %30 = vector.load %arg6[%c0_21, %c0_22] : memref<8x1xf32, #tpu.memory_space<vmem>>, vector<8x1xf32>
      %c0_23 = arith.constant 0 : index
      %c0_24 = arith.constant 0 : index
      %31 = vector.load %arg7[%c0_23, %c0_24] : memref<8x1xf32, #tpu.memory_space<vmem>>, vector<8x1xf32>
      %32 = arith.subf %30, %31 : vector<8x1xf32>
      %cst_25 = arith.constant 1.250000e-01 : f32
      %33 = vector.broadcast %cst_25 : f32 to vector<8x1xf32>
      %34 = arith.mulf %32, %33 : vector<8x1xf32>
      %cst_26 = arith.constant 1.000000e+00 : f32
      %35 = vector.broadcast %cst_26 : f32 to vector<8x1xf32>
      %36 = arith.addf %34, %35 : vector<8x1xf32>
      %cst_27 = arith.constant 0.000000e+00 : f32
      %37 = vector.broadcast %cst_27 : f32 to vector<8x1xf32>
      %38 = arith.maximumf %36, %37 : vector<8x1xf32>
      %39 = vector.shape_cast %38 : vector<8x1xf32> to vector<8x1xf32>
      %40 = vector.broadcast %39 : vector<8x1xf32> to vector<8x128xf32>
      %c0_28 = arith.constant 0 : index
      %c0_29 = arith.constant 0 : index
      %41 = vector.load %arg5[%c0_28, %c0_29] : memref<8x128xf32, #tpu.memory_space<vmem>>, vector<8x128xf32>
      tpu.vector_store %arg5[%c0_28, %c0_29], %40 {strides = array<i32>} : memref<8x128xf32, #tpu.memory_space<vmem>>, vector<8x128xf32>,
    } else {
    }
    return
  }
  func.func @transform_0(%arg0: i32, %arg1: i32) -> (i32, i32) {
    %c0_i32 = arith.constant 0 : i32
    %c0_i32_0 = arith.constant 0 : i32
    return %arg0, %c0_i32 : i32, i32
  }
  func.func @transform_1(%arg0: i32, %arg1: i32) -> (i32, i32, i32) {
    %c0_i32 = arith.constant 0 : i32
    %c0_i32_0 = arith.constant 0 : i32
    return %arg0, %arg1, %c0_i32 : i32, i32, i32
  }
  func.func @transform_2(%arg0: i32, %arg1: i32) -> (i32, i32, i32) {
    %c0_i32 = arith.constant 0 : i32
    %c0_i32_0 = arith.constant 0 : i32
    return %arg0, %arg1, %c0_i32 : i32, i32, i32
  }
  func.func @transform_3(%arg0: i32, %arg1: i32) -> (i32, i32) {
    %c0_i32 = arith.constant 0 : i32
    %c0_i32_0 = arith.constant 0 : i32
    return %arg0, %c0_i32 : i32, i32
  }
}

</mosaic_0001>

<bundles_post_ra>
// kernel: tpu_custom_call.1
= control target key start
LH: loop header
LB: loop body
LE: loop exit
PB: predicated region body
PF: predicated region fallthrough
CT: control target
= control target key end

     0   :  { %8 = vsyncpa [#allocation5], 0  ;;  %s967_s0 = inlined_call_operand.hbm [shape: f32[8,32], index: 0, kind: input, shape index: {}]   ;;  %s968_s1 = inlined_call_operand.hbm [shape: f32[8,8,32], index: 1, kind: input, shape index: {}]   ;;  %s969_s2 = inlined_call_operand.hbm [shape: f32[8,8,32], index: 2, kind: input, shape index: {}]   ;;  %s970_s3 = inlined_call_operand.hbm [shape: f32[8,128], index: 3, kind: output, shape index: {}]  }
   0x1   :  { %9 = vsyncpa [#allocation8], 0  ;;  %s26_s14 = sshll.u32 %s968_s1, 4  ;;  %s27_s14 = int_to_ptr.hbm [resolvable:$true] %s26_s14 }
   0x2   :  { %10 = vsyncpa [#allocation6], 0  ;;  %s628_s15 = smov [#allocation7]   ;;  %s16_s19 = sshll.u32 %s967_s0, 4  ;;  %s17_s19 = int_to_ptr.hbm [resolvable:$true] %s16_s19 }
   0x3   :  { %s28_s16 = sshll.u32 %s628_s15, 4  ;;  %s629_s20 = smov 128   ;;  %s29_s16 = int_to_ptr.vmem [resolvable:$true] %s28_s16 }
   0x4   :  { %s630_s21 = smov 8   ;;  %s631_s22 = smov [#allocation4]  }
   0x5   :  { %34 = dma.hbm_to_vmem [thread:$0]  %s27_s14, 1024, %s29_s16, [#allocation8], %s629_s20, %s629_s20, %s630_s21  }
   0x6   :  { %s18_s23 = sshll.u32 %s631_s22, 4  ;;  %s39_s26 = sshll.u32 %s969_s2, 4  ;;  %s19_s23 = int_to_ptr.vmem [resolvable:$true] %s18_s23  ;;  %s40_s26 = int_to_ptr.hbm [resolvable:$true] %s39_s26 }
   0x7   :  { %21 = dma.hbm_to_vmem [thread:$0]  %s17_s19, 128, %s19_s23, [#allocation5]  }
   0x8   :  { %s632_s1 = smov [#allocation9]  }
   0x9   :  { %s41_s27 = sshll.u32 %s632_s1, 4  ;;  %s42_s27 = int_to_ptr.vmem [resolvable:$true] %s41_s27 }
   0xa   :  { %47 = dma.hbm_to_vmem [thread:$0]  %s40_s26, 1024, %s42_s27, [#allocation8], %s629_s20, %s629_s20, %s630_s21  }
   0xb   :  { %622 = dma.done.wait [#allocation5], 128  }
   0xc   :  { %623 = vsyncadd [#allocation5], 4294967168 }
   0xd   :  { %624 = dma.done.wait [#allocation8], 2048  }
   0xe   :  { %625 = vsyncadd [#allocation8], 4294965248  ;;  %v665_v0 = vld [vmem:[#allocation4] sm:$0xff]  ;;  %v76_v1 = vld [vmem:[#allocation9] sm:$0xff]  ;;  %vm124_vm0 = vcmask 261120   ;;  %s635_s0 = smov [#allocation10]  }
   0xf   :  { %v68_v2 = vld [vmem:[#allocation7] sm:$0xff]  ;;  %v92_v3 = vperm.slane %v665_v0, 0  ;;  %v86_v4 = vrot.slane %v665_v0, 2  ;;  %v85_v5 = vrot.slane %v665_v0, 1  ;;  %v70_v6 = vld [vmem:[#allocation7 + $0x10] sm:$0xff]  ;;  %v77_v7 = vld [vmem:[#allocation9 + $0x8] sm:$0xff] }
  0x10   :  { %v69_v12 = vld [vmem:[#allocation7 + $0x8] sm:$0xff]  ;;  %v78_v13 = vld [vmem:[#allocation9 + $0x10] sm:$0xff]  ;;  %v87_v14 = vrot.slane %v665_v0, 3  ;;  %v88_v20 = vrot.slane %v665_v0, 4  ;;  %v79_v29 = vld [vmem:[#allocation9 + $0x18] sm:$0xff]  ;;  %v89_v34 = vrot.slane %v665_v0, 5 }
  0x11   :  { %v149_v8 = vsub.f32 %v92_v3, %v76_v1  ;;  %v108_v9 = vsub.f32 %v92_v3, %v68_v2  ;;  %v94_v10 = vperm.slane %v86_v4, 0  ;;  %v93_v11 = vperm.slane %v85_v5, 0  ;;  %v71_v30 = vld [vmem:[#allocation7 + $0x18] sm:$0xff]  ;;  %v72_v33 = vld [vmem:[#allocation7 + $0x20] sm:$0xff]  ;;  %v73_v44 = vld [vmem:[#allocation7 + $0x28] sm:$0xff]  ;;  %s472_s2 = sshll.u32 %s635_s0, 4  ;;  %s473_s2 = int_to_ptr.vmem [resolvable:$true] %s472_s2 }
  0x12   :  { %v95_v28 = vperm.slane %v87_v14, 0  ;;  %v96_v32 = vperm.slane %v88_v20, 0  ;;  %v97_v43 = vperm.slane %v89_v34, 0  ;;  %v80_v45 = vld [vmem:[#allocation9 + $0x20] sm:$0xff]  ;;  %v81_v47 = vld [vmem:[#allocation9 + $0x28] sm:$0xff]  ;;  %v90_v48 = vrot.slane %v665_v0, 6 }
  0x13   :  { %v157_v15 = vmul.f32 %v149_v8, %v149_v8  ;;  %v116_v16 = vmul.f32 %v108_v9, %v108_v9  ;;  %v110_v17 = vsub.f32 %v94_v10, %v70_v6  ;;  %v150_v18 = vsub.f32 %v93_v11, %v77_v7  ;;  %v82_v59 = vld [vmem:[#allocation9 + $0x30] sm:$0xff]  ;;  %v75_v63 = vld [vmem:[#allocation7 + $0x38] sm:$0xff]  ;;  %s474_s30 = sshll.u32 %s970_s3, 4  ;;  %s475_s30 = int_to_ptr.hbm [resolvable:$true] %s474_s30 }
  0x14   :  { %v109_v19 = vsub.f32 %v93_v11, %v69_v12  ;;  %v151_v24 = vsub.f32 %v94_v10, %v78_v13  ;;  %v152_v37 = vsub.f32 %v95_v28, %v79_v29  ;;  %v111_v38 = vsub.f32 %v95_v28, %v71_v30  ;;  %v74_v60 = vld [vmem:[#allocation7 + $0x30] sm:$0xff]  ;;  %v83_v8 = vld [vmem:[#allocation9 + $0x38] sm:$0xff] }
  0x15   :  { %v165_v21 = vsel %vm124_vm0, %v157_v15, 0.0  ;;  %v125_v22 = vsel %vm124_vm0, %v116_v16, 0.0  ;;  %v118_v23 = vmul.f32 %v110_v17, %v110_v17  ;;  %v158_v26 = vmul.f32 %v150_v18, %v150_v18 }
  0x16   :  { %166 = vadd.xlane.f32.xlu1 %v165_v21  ;;  %126 = vadd.xlane.f32.xlu0 %v125_v22  ;;  %v117_v27 = vmul.f32 %v109_v19, %v109_v19  ;;  %v159_v31 = vmul.f32 %v151_v24, %v151_v24  ;;  %v112_v40 = vsub.f32 %v96_v32, %v72_v33  ;;  %v91_v55 = vrot.slane %v665_v0, 7 }
  0x17   :  { %v131_v25 = vsel %vm124_vm0, %v118_v23, 0.0  ;;  %v168_v35 = vsel %vm124_vm0, %v158_v26, 0.0  ;;  %v160_v41 = vmul.f32 %v152_v37, %v152_v37  ;;  %v119_v42 = vmul.f32 %v111_v38, %v111_v38 }
  0x18   :  { %132 = vadd.xlane.f32.xlu2 %v131_v25  ;;  %v128_v36 = vsel %vm124_vm0, %v117_v27, 0.0  ;;  %v171_v39 = vsel %vm124_vm0, %v159_v31, 0.0  ;;  %v120_v46 = vmul.f32 %v112_v40, %v112_v40  ;;  %v113_v51 = vsub.f32 %v97_v43, %v73_v44 }
  0x19   :  { %v174_v49 = vsel %vm124_vm0, %v160_v41, 0.0  ;;  %v134_v50 = vsel %vm124_vm0, %v119_v42, 0.0  ;;  %v153_v52 = vsub.f32 %v96_v32, %v80_v45  ;;  %v154_v54 = vsub.f32 %v97_v43, %v81_v47 }
  0x1a   :  { %v137_v53 = vsel %vm124_vm0, %v120_v46, 0.0  ;;  %v121_v56 = vmul.f32 %v113_v51, %v113_v51  ;;  %v98_v58 = vperm.slane %v90_v48, 0  ;;  %v99_v62 = vperm.slane %v91_v55, 0 }
  0x1b   :  { %v161_v57 = vmul.f32 %v153_v52, %v153_v52  ;;  %v162_v61 = vmul.f32 %v154_v54, %v154_v54  ;;  %v390_v30 = vlaneseq }
  0x1c   :  { %v140_v1 = vsel %vm124_vm0, %v121_v56, 0.0  ;;  %v155_v3 = vsub.f32 %v98_v58, %v82_v59  ;;  %v114_v4 = vsub.f32 %v98_v58, %v74_v60  ;;  %v115_v0 = vsub.f32 %v99_v62, %v75_v63 }
  0x1d   :  { %v177_v2 = vsel %vm124_vm0, %v161_v57, 0.0  ;;  %v180_v5 = vsel %vm124_vm0, %v162_v61, 0.0  ;;  %v156_v12 = vsub.f32 %v99_v62, %v83_v8 }
  0x1e   :  { %169 = vadd.xlane.f32.xlu1 %v168_v35  ;;  %129 = vadd.xlane.f32.xlu0 %v128_v36  ;;  %v163_v6 = vmul.f32 %v155_v3, %v155_v3  ;;  %v122_v7 = vmul.f32 %v114_v4, %v114_v4  ;;  %v123_v9 = vmul.f32 %v115_v0, %v115_v0 }
  0x1f   :  { %v164_v14 = vmul.f32 %v156_v12, %v156_v12 }
  0x20   :  { %172 = vadd.xlane.f32.xlu2 %v171_v39  ;;  %v183_v10 = vsel %vm124_vm0, %v163_v6, 0.0  ;;  %v143_v11 = vsel %vm124_vm0, %v122_v7, 0.0  ;;  %v146_v13 = vsel %vm124_vm0, %v123_v9, 0.0  ;;  %v712_v39 = vand.u32 127, %v390_v30 }
  0x21   :  { %v186_v15 = vsel %vm124_vm0, %v164_v14, 0.0  ;;  %vm400_vm0 = vcmask 1041409  }
  0x26   :  { %175 = vadd.xlane.f32.xlu1 %v174_v49  ;;  %135 = vadd.xlane.f32.xlu0 %v134_v50 }
  0x28   :  { %138 = vadd.xlane.f32.xlu2 %v137_v53 }
  0x2e   :  { %141 = vadd.xlane.f32.xlu1 %v140_v1  ;;  %178 = vadd.xlane.f32.xlu0 %v177_v2 }
  0x30   :  { %181 = vadd.xlane.f32.xlu2 %v180_v5 }
  0x36   :  { %184 = vadd.xlane.f32.xlu1 %v183_v10  ;;  %144 = vadd.xlane.f32.xlu0 %v143_v11 }
  0x38   :  { %147 = vadd.xlane.f32.xlu2 %v146_v13 }
  0x3e   :  { %187 = vadd.xlane.f32.xlu0 %v186_v15 }
  0x89   :  { %v691_v16 = vpop.xlane.xlu1 %166  ;;  %v693_v17 = vpop.xlane.xlu0 %126 }
  0x8a   :  { %494 = vrsqrt.f32 %v691_v16  ;;  %vm292_vm1 = vcmp.eq.f32.partialorder %v691_v16, inf  ;;  %vm294_vm2 = vcmp.eq.f32.partialorder %v691_v16, 0.0  ;;  %v295_v48 = vand.u32 2147483648, %v691_v16 }
  0x8b   :  { %496 = vrsqrt.f32 %v693_v17  ;;  %v697_v18 = vpop.xlane.xlu2 %132  ;;  %vm196_vm3 = vcmp.eq.f32.partialorder %v693_v17, inf  ;;  %vm198_vm4 = vcmp.eq.f32.partialorder %v693_v17, 0.0  ;;  %v199_v57 = vand.u32 2147483648, %v693_v17 }
  0x8c   :  { %498 = vrsqrt.f32 %v697_v18  ;;  %vm220_vm5 = vcmp.eq.f32.partialorder %v697_v18, inf  ;;  %vm222_vm6 = vcmp.eq.f32.partialorder %v697_v18, 0.0  ;;  %v223_v60 = vand.u32 2147483648, %v697_v18 }
  0x90   :  { %v495_v19 = vpop.eup %494 }
  0x91   :  { %v497_v20 = vpop.eup %496  ;;  %v286_v21 = vmul.f32 %v495_v19, %v691_v16  ;;  %v701_v22 = vpop.xlane.xlu1 %169 }
  0x92   :  { %v703_v23 = vpop.xlane.xlu0 %129  ;;  %v499_v24 = vpop.eup %498  ;;  %v190_v25 = vmul.f32 %v497_v20, %v693_v17  ;;  %500 = vrsqrt.f32 %v701_v22  ;;  %vm304_vm7 = vcmp.eq.f32.partialorder %v701_v22, inf  ;;  %v307_v62 = vand.u32 2147483648, %v701_v22 }
  0x93   :  { %v287_v26 = vmul.f32 %v495_v19, %v286_v21  ;;  %v214_v27 = vmul.f32 %v499_v24, %v697_v18  ;;  %502 = vrsqrt.f32 %v703_v23  ;;  %v709_v28 = vpop.xlane.xlu2 %172  ;;  %vm208_vm8 = vcmp.eq.f32.partialorder %v703_v23, inf }
  0x94   :  { %v191_v29 = vmul.f32 %v497_v20, %v190_v25  ;;  %504 = vrsqrt.f32 %v709_v28  ;;  %vm306_vm9 = vcmp.eq.f32.partialorder %v701_v22, 0.0  ;;  %vm210_vm10 = vcmp.eq.f32.partialorder %v703_v23, 0.0 }
  0x95   :  { %v288_v31 = vmul.f32 0.5, %v287_v26  ;;  %v215_v32 = vmul.f32 %v499_v24, %v214_v27  ;;  %v211_v14 = vand.u32 2147483648, %v703_v23  ;;  %vm316_vm11 = vcmp.eq.f32.partialorder %v709_v28, inf }
  0x96   :  { %v192_v33 = vmul.f32 0.5, %v191_v29  ;;  %vm318_vm12 = vcmp.eq.f32.partialorder %v709_v28, 0.0 }
  0x97   :  { %v289_v34 = vsub.f32 1.5, %v288_v31  ;;  %v216_v35 = vmul.f32 0.5, %v215_v32 }
  0x98   :  { %v501_v36 = vpop.eup %500  ;;  %v193_v37 = vsub.f32 1.5, %v192_v33 }
  0x99   :  { %v503_v38 = vpop.eup %502  ;;  %v290_v40 = vmul.f32 %v495_v19, %v289_v34  ;;  %v217_v41 = vsub.f32 1.5, %v216_v35  ;;  %v298_v42 = vmul.f32 %v501_v36, %v701_v22  ;;  %v715_v43 = vpop.xlane.xlu1 %175 }
  0x9a   :  { %v717_v44 = vpop.xlane.xlu0 %135  ;;  %v194_v45 = vmul.f32 %v497_v20, %v193_v37  ;;  %v202_v46 = vmul.f32 %v503_v38, %v703_v23  ;;  %506 = vrsqrt.f32 %v715_v43  ;;  %v505_v47 = vpop.eup %504  ;;  %v331_v29 = vand.u32 2147483648, %v715_v43 }
  0x9b   :  { %v299_v49 = vmul.f32 %v501_v36, %v298_v42  ;;  %v725_v50 = vpop.xlane.xlu2 %138  ;;  %v291_v51 = vmul.f32 %v290_v40, %v691_v16  ;;  %v310_v53 = vmul.f32 %v505_v47, %v709_v28  ;;  %v218_v55 = vmul.f32 %v499_v24, %v217_v41 }
  0x9c   :  { %v203_v52 = vmul.f32 %v503_v38, %v202_v46  ;;  %v195_v54 = vmul.f32 %v194_v45, %v693_v17  ;;  %508 = vrsqrt.f32 %v717_v44  ;;  %vm328_vm13 = vcmp.eq.f32.partialorder %v715_v43, inf }
  0x9d   :  { %v300_v56 = vmul.f32 0.5, %v299_v49  ;;  %v311_v59 = vmul.f32 %v505_v47, %v310_v53  ;;  %v293_v1 = vsel %vm292_vm1, %v691_v16, %v291_v51  ;;  %v219_v5 = vmul.f32 %v218_v55, %v697_v18 }
  0x9e   :  { %v204_v58 = vmul.f32 0.5, %v203_v52  ;;  %v197_v4 = vsel %vm196_vm3, %v693_v17, %v195_v54  ;;  %510 = vrsqrt.f32 %v725_v50  ;;  %v756_v12 = vsel %vm294_vm2, %v295_v48, %v293_v1 }
  0x9f   :  { %v301_v61 = vsub.f32 1.5, %v300_v56  ;;  %v312_v3 = vmul.f32 0.5, %v311_v59  ;;  %v764_v20 = vsel %vm198_vm4, %v199_v57, %v197_v4  ;;  %v221_v16 = vsel %vm220_vm5, %v697_v18, %v219_v5 }
  0xa0   :  { %v507_v63 = vpop.eup %506  ;;  %v205_v2 = vsub.f32 1.5, %v204_v58  ;;  %v431_v27 = vperm.slane %v756_v12, %v712_v39  ;;  %v319_v17 = vand.u32 2147483648, %v709_v28  ;;  %v392_v31 = vperm.slane %v764_v20, %v712_v39 }
  0xa1   :  { %v302_v0 = vmul.f32 %v501_v36, %v301_v61  ;;  %v322_v6 = vmul.f32 %v507_v63, %v715_v43  ;;  %v748_v7 = vpop.xlane.xlu1 %141  ;;  %v313_v10 = vsub.f32 1.5, %v312_v3  ;;  %v787_v36 = vsel %vm222_vm6, %v223_v60, %v221_v16 }
  0xa2   :  { %v750_v8 = vpop.xlane.xlu0 %178  ;;  %v206_v9 = vmul.f32 %v503_v38, %v205_v2  ;;  %v509_v11 = vpop.eup %508  ;;  %512 = vrsqrt.f32 %v748_v7  ;;  %vm232_vm14 = vcmp.eq.f32.partialorder %v717_v44, inf  ;;  %vm234_vm15 = vcmp.eq.f32.partialorder %v717_v44, 0.0 }
  0xa3   :  { %v303_v13 = vmul.f32 %v302_v0, %v701_v22  ;;  %v323_v15 = vmul.f32 %v507_v63, %v322_v6  ;;  %v760_v19 = vpop.xlane.xlu2 %181  ;;  %v314_v24 = vmul.f32 %v505_v47, %v313_v10  ;;  %v226_v25 = vmul.f32 %v509_v11, %v717_v44 }
  0xa4   :  { %v207_v21 = vmul.f32 %v206_v9, %v703_v23  ;;  %v511_v35 = vpop.eup %510  ;;  %514 = vrsqrt.f32 %v750_v8  ;;  %v235_v47 = vand.u32 2147483648, %v717_v44  ;;  %v247_v53 = vand.u32 2147483648, %v725_v50 }
  0xa5   :  { %v324_v26 = vmul.f32 0.5, %v323_v15  ;;  %v227_v30 = vmul.f32 %v509_v11, %v226_v25  ;;  %v305_v32 = vsel %vm304_vm7, %v701_v22, %v303_v13  ;;  %v315_v33 = vmul.f32 %v314_v24, %v709_v28 }
  0xa6   :  { %v209_v37 = vsel %vm208_vm8, %v703_v23, %v207_v21  ;;  %v238_v41 = vmul.f32 %v511_v35, %v725_v50  ;;  %v802_v18 = vsel %vm306_vm9, %v307_v62, %v305_v32  ;;  %516 = vrsqrt.f32 %v760_v19 }
  0xa7   :  { %v325_v34 = vsub.f32 1.5, %v324_v26  ;;  %v228_v38 = vmul.f32 0.5, %v227_v30  ;;  %v212_v49 = vsel %vm210_vm10, %v211_v14, %v209_v37  ;;  %v317_v51 = vsel %vm316_vm11, %v709_v28, %v315_v33 }
  0xa8   :  { %v513_v48 = vpop.eup %512  ;;  %v239_v52 = vmul.f32 %v511_v35, %v238_v41  ;;  %vm244_vm1 = vcmp.eq.f32.partialorder %v725_v50, inf  ;;  %v432_v23 = vperm.slane %v802_v18, %v712_v39  ;;  %vm246_vm2 = vcmp.eq.f32.partialorder %v725_v50, 0.0 }
  0xa9   :  { %v326_v40 = vmul.f32 %v507_v63, %v325_v34  ;;  %v796_v42 = vpop.xlane.xlu1 %184  ;;  %v229_v46 = vsub.f32 1.5, %v228_v38  ;;  %v250_v56 = vmul.f32 %v513_v48, %v748_v7  ;;  %v259_v58 = vand.u32 2147483648, %v748_v7 }
  0xaa   :  { %v798_v45 = vpop.xlane.xlu0 %144  ;;  %518 = vrsqrt.f32 %v796_v42  ;;  %v240_v57 = vmul.f32 0.5, %v239_v52  ;;  %v515_v59 = vpop.eup %514  ;;  %v393_v60 = vperm.slane %v212_v49, %v712_v39  ;;  %v828_v63 = vsel %vm318_vm12, %v319_v17, %v317_v51 }
  0xab   :  { %v812_v54 = vpop.xlane.xlu2 %147  ;;  %v327_v22 = vmul.f32 %v326_v40, %v715_v43  ;;  %v230_v55 = vmul.f32 %v509_v11, %v229_v46  ;;  %520 = vrsqrt.f32 %v798_v45  ;;  %v251_v62 = vmul.f32 %v513_v48, %v250_v56 }
  0xac   :  { %522 = vrsqrt.f32 %v812_v54  ;;  %v241_v1 = vsub.f32 1.5, %v240_v57  ;;  %vm256_vm3 = vcmp.eq.f32.partialorder %v748_v7, inf  ;;  %v334_v2 = vmul.f32 %v515_v59, %v750_v8  ;;  %v517_v4 = vpop.eup %516 }
  0xad   :  { %v231_v61 = vmul.f32 %v230_v55, %v717_v44  ;;  %v343_v3 = vand.u32 2147483648, %v750_v8  ;;  %v836_v5 = vsel %vm328_vm13, %v715_v43, %v327_v22  ;;  %v252_v28 = vmul.f32 0.5, %v251_v62 }
  0xae   :  { %v355_v6 = vand.u32 2147483648, %v760_v19  ;;  %v242_v9 = vmul.f32 %v511_v35, %v241_v1  ;;  %v335_v10 = vmul.f32 %v515_v59, %v334_v2  ;;  %v346_v11 = vmul.f32 %v517_v4, %v760_v19 }
  0xaf   :  { %v233_v0 = vsel %vm232_vm14, %v717_v44, %v231_v61  ;;  %vm258_vm4 = vcmp.eq.f32.partialorder %v748_v7, 0.0  ;;  %v253_v21 = vsub.f32 1.5, %v252_v28  ;;  %v271_v24 = vand.u32 2147483648, %v798_v45 }
  0xb0   :  { %v236_v14 = vsel %vm234_vm15, %v235_v47, %v233_v0  ;;  %v519_v15 = vpop.eup %518  ;;  %v394_v25 = vperm.slane %v787_v36, %v712_v39  ;;  %v243_v26 = vmul.f32 %v242_v9, %v725_v50  ;;  %v336_v17 = vmul.f32 0.5, %v335_v10 }
  0xb1   :  { %v521_v16 = vpop.eup %520  ;;  %v347_v30 = vmul.f32 %v517_v4, %v346_v11  ;;  %v358_v32 = vmul.f32 %v519_v15, %v796_v42  ;;  %v254_v33 = vmul.f32 %v513_v48, %v253_v21  ;;  %vm340_vm5 = vcmp.eq.f32.partialorder %v750_v8, inf }
  0xb2   :  { %v843_v13 = vpop.xlane.xlu0 %187  ;;  %v523_v44 = vpop.eup %522  ;;  %v262_v34 = vmul.f32 %v521_v16, %v798_v45  ;;  %v395_v35 = vperm.slane %v236_v14, %v712_v39  ;;  %v401_v36 = vsel %vm400_vm0, %v393_v60, %v392_v31  ;;  %v245_v37 = vsel %vm244_vm1, %v725_v50, %v243_v26 }
  0xb3   :  { %524 = vrsqrt.f32 %v843_v13  ;;  %v337_v38 = vsub.f32 1.5, %v336_v17  ;;  %v348_v40 = vmul.f32 0.5, %v347_v30  ;;  %v359_v41 = vmul.f32 %v519_v15, %v358_v32 }
  0xb4   :  { %v255_v46 = vmul.f32 %v254_v33, %v748_v7  ;;  %v263_v47 = vmul.f32 %v521_v16, %v262_v34  ;;  %v274_v48 = vmul.f32 %v523_v44, %v812_v54  ;;  %v248_v49 = vsel %vm246_vm2, %v247_v53, %v245_v37 }
  0xb5   :  { %v338_v51 = vmul.f32 %v515_v59, %v337_v38  ;;  %v349_v52 = vsub.f32 1.5, %v348_v40  ;;  %vm352_vm6 = vcmp.eq.f32.partialorder %v760_v19, inf  ;;  %v360_v20 = vmul.f32 0.5, %v359_v41 }
  0xb6   :  { %vm268_vm7 = vcmp.eq.f32.partialorder %v798_v45, inf  ;;  %vm402_vm8 = vcmask 1042434   ;;  %vm330_vm9 = vcmp.eq.f32.partialorder %v715_v43, 0.0  ;;  %vm342_vm10 = vcmp.eq.f32.partialorder %v750_v8, 0.0 }
  0xb7   :  { %v264_v22 = vmul.f32 0.5, %v263_v47  ;;  %v275_v55 = vmul.f32 %v523_v44, %v274_v48  ;;  %v257_v50 = vsel %vm256_vm3, %v748_v7, %v255_v46  ;;  %vm270_vm11 = vcmp.eq.f32.partialorder %v798_v45, 0.0 }
  0xb8   :  { %v396_v53 = vperm.slane %v248_v49, %v712_v39  ;;  %v339_v56 = vmul.f32 %v338_v51, %v750_v8  ;;  %v350_v57 = vmul.f32 %v517_v4, %v349_v52  ;;  %v361_v59 = vsub.f32 1.5, %v360_v20 }
  0xb9   :  { %v525_v31 = vpop.eup %524  ;;  %vm280_vm12 = vcmp.eq.f32.partialorder %v812_v54, inf  ;;  %v265_v61 = vsub.f32 1.5, %v264_v22  ;;  %v276_v62 = vmul.f32 0.5, %v275_v55  ;;  %v260_v1 = vsel %vm258_vm4, %v259_v58, %v257_v50 }
  0xba   :  { %v370_v60 = vmul.f32 %v525_v31, %v843_v13  ;;  %vm404_vm13 = vcmask 1043459   ;;  %v351_v2 = vmul.f32 %v350_v57, %v760_v19  ;;  %v362_v0 = vmul.f32 %v519_v15, %v361_v59 }
  0xbb   :  { %v403_v9 = vsel %vm402_vm8, %v394_v25, %v401_v36  ;;  %v266_v4 = vmul.f32 %v521_v16, %v265_v61  ;;  %v277_v10 = vsub.f32 1.5, %v276_v62  ;;  %v397_v11 = vperm.slane %v260_v1, %v712_v39 }
  0xbc   :  { %v371_v28 = vmul.f32 %v525_v31, %v370_v60  ;;  %v405_v14 = vsel %vm404_vm13, %v395_v35, %v403_v9  ;;  %v341_v21 = vsel %vm340_vm5, %v750_v8, %v339_v56  ;;  %vm282_vm14 = vcmp.eq.f32.partialorder %v812_v54, 0.0 }
  0xbd   :  { %vm406_vm15 = vcmask 1044484   ;;  %vm408_vm1 = vcmask 1045509   ;;  %v363_v7 = vmul.f32 %v362_v0, %v796_v42  ;;  %v267_v58 = vmul.f32 %v266_v4, %v798_v45 }
  0xbe   :  { %v278_v15 = vmul.f32 %v523_v44, %v277_v10  ;;  %v407_v25 = vsel %vm406_vm15, %v396_v53, %v405_v14  ;;  %v372_v16 = vmul.f32 0.5, %v371_v28  ;;  %v283_v26 = vand.u32 2147483648, %v812_v54 }
  0xbf   :  { %v409_v17 = vsel %vm408_vm1, %v397_v11, %v407_v25  ;;  %vm410_vm2 = vcmask 1046534   ;;  %v269_v30 = vsel %vm268_vm7, %v798_v45, %v267_v58  ;;  %vm412_vm3 = vcmask 1047559  }
  0xc0   :  { %v279_v32 = vmul.f32 %v278_v15, %v812_v54  ;;  %v353_v33 = vsel %vm352_vm6, %v760_v19, %v351_v2  ;;  %v272_v44 = vsel %vm270_vm11, %v271_v24, %v269_v30  ;;  %v332_v34 = vsel %vm330_vm9, %v331_v29, %v836_v5 }
  0xc1   :  { %v344_v35 = vsel %vm342_vm10, %v343_v3, %v341_v21  ;;  %vm364_vm4 = vcmp.eq.f32.partialorder %v796_v42, inf  ;;  %v398_v45 = vperm.slane %v272_v44, %v712_v39  ;;  %vm354_vm5 = vcmp.eq.f32.partialorder %v760_v19, 0.0 }
  0xc2   :  { %v281_v36 = vsel %vm280_vm12, %v812_v54, %v279_v32  ;;  %v365_v24 = vsel %vm364_vm4, %v796_v42, %v363_v7  ;;  %v356_v29 = vsel %vm354_vm5, %v355_v6, %v353_v33  ;;  %v367_v8 = vand.u32 2147483648, %v796_v42 }
  0xc3   :  { %v284_v43 = vsel %vm282_vm14, %v283_v26, %v281_v36  ;;  %v373_v3 = vsub.f32 1.5, %v372_v16  ;;  %v411_v37 = vsel %vm410_vm2, %v398_v45, %v409_v17  ;;  %vm415_vm6 = vcmask 64512  }
  0xc4   :  { %v399_v5 = vperm.slane %v284_v43, %v712_v39  ;;  %vm366_vm7 = vcmp.eq.f32.partialorder %v796_v42, 0.0  ;;  %v433_v41 = vperm.slane %v828_v63, %v712_v39  ;;  %v434_v54 = vperm.slane %v332_v34, %v712_v39 }
  0xc5   :  { %v368_v38 = vsel %vm366_vm7, %v367_v8, %v365_v24  ;;  %v374_v40 = vmul.f32 %v525_v31, %v373_v3  ;;  %vm376_vm9 = vcmp.eq.f32.partialorder %v843_v13, inf  ;;  %v435_v6 = vperm.slane %v344_v35, %v712_v39 }
  0xc6   :  { %v413_v19 = vsel %vm412_vm3, %v399_v5, %v411_v37  ;;  %v436_v46 = vperm.slane %v356_v29, %v712_v39  ;;  %v439_v42 = vsel %vm400_vm0, %v432_v23, %v431_v27  ;;  %vm64_vm10 = vcmask 7168  }
  0xc7   :  { %v416_v47 = vsel %vm415_vm6, %v413_v19, 0.0  ;;  %v375_v48 = vmul.f32 %v374_v40, %v843_v13  ;;  %v379_v63 = vand.u32 2147483648, %v843_v13  ;;  %v437_v49 = vperm.slane %v368_v38, %v712_v39 }
  0xc8   :  { %417 = vadd.xlane.f32.xlu1 %v416_v47  ;;  %v440_v51 = vsel %vm402_vm8, %v433_v41, %v439_v42  ;;  %vm378_vm11 = vcmp.eq.f32.partialorder %v843_v13, 0.0  ;;  %v633_v12 = vmov 0.0   ;;  %v634_v50 = vmov 0  }
  0xc9   :  { %v377_v52 = vsel %vm376_vm9, %v843_v13, %v375_v48  ;;  %v441_v20 = vsel %vm404_vm13, %v434_v54, %v440_v51  ;;  %65 = vst.msk [vmem:[#allocation2] sm:$0xff] %vm64_vm10, %v633_v12  ;;  %493 = vset.pattern.permute.xlu0 %v634_v50 }
  0xca   :  { %v380_v18 = vsel %vm378_vm11, %v379_v63, %v377_v52  ;;  %v442_v27 = vsel %vm406_vm15, %v435_v6, %v441_v20  ;;  %66 = vst.msk [vmem:[#allocation3] sm:$0xff] %vm64_vm10, %v633_v12 }
  0xcb   :  { %v438_v23 = vperm.slane %v380_v18, %v712_v39  ;;  %v443_v31 = vsel %vm408_vm1, %v436_v46, %v442_v27 }
  0xcc   :  { %v444_v22 = vsel %vm410_vm2, %v437_v49, %v443_v31 }
  0xcd   :  { %v445_v55 = vsel %vm412_vm3, %v438_v23, %v444_v22 }
  0xce   :  { %v447_v13 = vsel %vm415_vm6, %v445_v55, 0.0 }
  0xcf   :  { %448 = vadd.xlane.f32.xlu2 %v447_v13 }
  0xd0   :  { %v381_v53 = vld [vmem:[#allocation2] sm:$0xff] }
  0xd1   :  { %v422_v59 = vld [vmem:[#allocation3] sm:$0xff] }
 0x13b   :  { %v418_v56 = vpop.xlane.xlu1 %417 }
 0x13c   :  { %v419_v57 = vadd.f32 %v418_v56, %v381_v53 }
 0x13e   :  { %421 = vst.msk [vmem:[#allocation2] sm:$0xff] %vm64_vm10, %v419_v57 }
 0x142   :  { %v449_v60 = vpop.xlane.xlu2 %448 }
 0x143   :  { %v450_v61 = vadd.f32 %v449_v60, %v422_v59 }
 0x145   :  { %451 = vst.msk [vmem:[#allocation3] sm:$0xff] %vm64_vm10, %v450_v61  ;;  %v455_v39 = vld [vmem:[#allocation2] sm:$0xff] }
 0x14c   :  { %v456_v62 = vld [vmem:[#allocation3] sm:$0xff] }
 0x14d   :  { %v457_v1 = vsub.f32 %v455_v39, %v456_v62 }
 0x14f   :  { %v458_v2 = vmul.f32 0.125, %v457_v1 }
 0x151   :  { %v459_v0 = vadd.f32 1.0, %v458_v2 }
 0x153   :  { %v460_v28 = vmax.f32 %v459_v0, 0.0 }
 0x155   :  { %463 = vperm.xlu0 %493, %v460_v28  }
 0x1c7   :  { %v464_v9 = vpop.permute.xlu0 %463 }
 0x1c8   :  { %466 = vst [vmem:[#allocation10] sm:$0xff] %v464_v9 }
 0x1c9   :  { %477 = dma.vmem_to_hbm [thread:$0]  %s473_s2, 128, %s475_s30, [#allocation6]  }
 0x1ca   :  { %626 = dma.done.wait [#allocation6], 128  }
 0x1cb   :  { %627 = vsyncadd [#allocation6], 4294967168 }
 0x1cc   :  { %482 = vsyncpa [#allocation5], 1 }
 0x1cd   :  { %483 = vsyncpa [#allocation8], 1 }
 0x1ce   :  { %484 = vsyncpa [#allocation6], 1 }

</bundles_post_ra>
